<compile_context>
chip_gen: v7x
topology: tpu7x:2x2x1
jax: 0.10.0
libtpu: 0.0.40
codegen_flags: <defaults>
</compile_context>

<pallas_src>
import functools

import jax
import jax.numpy as jnp
from jax.experimental import pallas as pl
from jax.experimental.pallas import tpu as pltpu

LANE = 128  # pad every hidden width to a full vreg lane width


def _round_up(x, m):
    return ((x + m - 1) // m) * m


def _pad2(a, rows, cols):
    r, c = a.shape
    return jnp.pad(a, ((0, rows - r), (0, cols - c)))


def critic_kernel(x_ref, w1_ref, b1_ref, w2_ref, b2_ref,
                  w3_ref, b3_ref, w4_ref, b4_ref, out_ref):
    """One batch tile, full 4-layer MLP. Weights/biases are VMEM-resident."""
    cd = w1_ref.dtype  # matmul operand dtype (bf16 default, f32 optional)

    # In-kernel cast: the state arrives f32 straight from HBM; the VPU has
    # plenty of slack to narrow it here.
    x = x_ref[...].astype(cd)

    h = jnp.dot(x, w1_ref[...], preferred_element_type=jnp.float32) + b1_ref[...]
    h = jnp.maximum(h, 0.0)

    h = jnp.dot(h.astype(cd), w2_ref[...],
                preferred_element_type=jnp.float32) + b2_ref[...]
    h = jnp.maximum(h, 0.0)

    h = jnp.dot(h.astype(cd), w3_ref[...],
                preferred_element_type=jnp.float32) + b3_ref[...]
    h = jnp.maximum(h, 0.0)

    # Width-1 head: VPU multiply + XLU lane reduce (skips a 127/128-wasted
    # matmul). Only the (tb, 1) value column is written to HBM.
    v = jnp.sum(h * w4_ref[...], axis=-1, keepdims=True) + b4_ref[...]
    out_ref[...] = v.astype(out_ref.dtype)


def prepare_params(params, compute_dtype=jnp.bfloat16):
    """Zero-pad hidden widths (and chained input widths) to 128 lanes and cast
    the matmul weights to the compute dtype. Zero padding is inert through the
    ReLUs and the head reduce, so the math is unchanged. Biases and the head
    weights stay f32 (they are tiny and VMEM-resident)."""
    prepped = {}
    in_rows = params["w1"].shape[0]
    for i in (1, 2, 3):
        w = params[f"w{i}"]
        b = params[f"b{i}"]
        prepped[f"w{i}"] = _pad2(w, in_rows, LANE).astype(compute_dtype)
        prepped[f"b{i}"] = _pad2(b, 1, LANE).astype(jnp.float32)
        in_rows = LANE
    # Head stored as a (1, 128) row so the kernel can do a VPU mul + lane
    # reduce; padded lanes are zero so they contribute nothing.
    prepped["w4"] = _pad2(params["w4"].T, 1, LANE).astype(jnp.float32)
    prepped["b4"] = params["b4"].astype(jnp.float32).reshape(1, 1)
    return prepped


def _choose_tile(B, block_b):
    """Batch tile: multiple of 8, big enough to amortize the per-grid-step
    overhead, but capped so there are >=2 grid steps (both TCs on v7x)."""
    if B <= 8:
        return B  # single tile equal to the full batch dim (handles B % 8 != 0)
    tb = min(block_b, _round_up(pl.cdiv(B, 2), 8))
    return max(8, (tb // 8) * 8)


@functools.partial(jax.jit, static_argnames=("block_b",))
def critic_forward(state, prepped, *, block_b=2048):
    """state: (B, input_dim) float32; prepped: output of prepare_params.
    Returns the value, shape (B, 1), float32."""
    B, in_dim = state.shape
    tb = _choose_tile(B, block_b)
    grid = (pl.cdiv(B, tb),)

    in_specs = [pl.BlockSpec((tb, in_dim), lambda i: (i, 0))]
    args = [state]
    for i in range(1, 5):
        for name in (f"w{i}", f"b{i}"):
            a = prepped[name]
            # Constant index_map -> parameter stays VMEM-resident across grid.
            in_specs.append(pl.BlockSpec(a.shape, lambda i: (0, 0)))
            args.append(a)

    param_bytes = sum(int(a.size) * jnp.dtype(a.dtype).itemsize
                      for a in prepped.values())
    cost = pl.CostEstimate(
        # 3 MXU matmuls + the VPU head reduce.
        flops=2 * B * (in_dim * LANE + 2 * LANE * LANE + LANE),
        transcendentals=0,
        bytes_accessed=B * in_dim * 4 + param_bytes + B * 4,
    )

    return pl.pallas_call(
        critic_kernel,
        out_shape=jax.ShapeDtypeStruct((B, 1), jnp.float32),
        grid=grid,
        in_specs=in_specs,
        out_specs=pl.BlockSpec((tb, 1), lambda i: (i, 0)),
        compiler_params=pltpu.CompilerParams(
            dimension_semantics=("parallel",)),
        cost_estimate=cost,
    )(*args)


def init_params(key, input_dim, hidden1, hidden2, hidden3):
    """Deterministic PyTorch-style init: U(-1/sqrt(fan_in), 1/sqrt(fan_in))."""
    dims = [(input_dim, hidden1), (hidden1, hidden2),
            (hidden2, hidden3), (hidden3, 1)]
    params = {}
    for i, (fan_in, fan_out) in enumerate(dims, start=1):
        key, kw, kb = jax.random.split(key, 3)
        bound = 1.0 / jnp.sqrt(jnp.float32(fan_in))
        params[f"w{i}"] = jax.random.uniform(
            kw, (fan_in, fan_out), jnp.float32, -bound, bound)
        params[f"b{i}"] = jax.random.uniform(
            kb, (1, fan_out), jnp.float32, -bound, bound)
    return params


def reference_forward(state, params):
    h = jnp.maximum(state @ params["w1"] + params["b1"], 0.0)
    h = jnp.maximum(h @ params["w2"] + params["b2"], 0.0)
    h = jnp.maximum(h @ params["w3"] + params["b3"], 0.0)
    return h @ params["w4"] + params["b4"]


if __name__ == "__main__":
    key = jax.random.PRNGKey(0)
    batch, input_dim = 8, 32
    hidden1, hidden2, hidden3 = 64, 64, 32

    key, kparam, kstate = jax.random.split(key, 3)
    params = init_params(kparam, input_dim, hidden1, hidden2, hidden3)
    state = jax.random.normal(kstate, (batch, input_dim), jnp.float32)

    ref = reference_forward(state, params)

    # Full-precision matmul path. Tolerance is a few 1e-3 because the XLA
    # reference's width-1 head runs at default TPU matmul precision while the
    # kernel's head is an exact f32 VPU reduce.
    prepped_f32 = prepare_params(params, compute_dtype=jnp.float32)
    value_f32 = jax.block_until_ready(critic_forward(state, prepped_f32))
    assert value_f32.shape == (batch, 1), value_f32.shape
    assert jnp.allclose(value_f32, ref, atol=5e-3, rtol=5e-3), (value_f32, ref)

    # bf16 matmul path (MXU-native on all generations; looser tolerance).
    prepped_bf16 = prepare_params(params, compute_dtype=jnp.bfloat16)
    value_bf16 = jax.block_until_ready(critic_forward(state, prepped_bf16))
    assert value_bf16.shape == (batch, 1), value_bf16.shape
    assert jnp.allclose(value_bf16, ref, atol=2e-2, rtol=2e-2), (value_bf16, ref)

    print("KERNEL_OK")
</pallas_src>

<mosaic_0001>
module attributes {stable_mosaic.version = 11 : i64} {
  func.func @critic_kernel(%arg0: i32, %arg1: memref<8x32xf32, #tpu.memory_space<vmem>>, %arg2: memref<32x128xf32, #tpu.memory_space<vmem>>, %arg3: memref<1x128xf32, #tpu.memory_space<vmem>>, %arg4: memref<128x128xf32, #tpu.memory_space<vmem>>, %arg5: memref<1x128xf32, #tpu.memory_space<vmem>>, %arg6: memref<128x128xf32, #tpu.memory_space<vmem>>, %arg7: memref<1x128xf32, #tpu.memory_space<vmem>>, %arg8: memref<1x128xf32, #tpu.memory_space<vmem>>, %arg9: memref<1x1xf32, #tpu.memory_space<vmem>>, %arg10: memref<8x1xf32, #tpu.memory_space<vmem>>) attributes {dimension_semantics = [#tpu.dimension_semantics<parallel>], iteration_bounds = array<i64: 1>, scalar_prefetch = 0 : i64, scratch_operands = 0 : i64, tpu.core_type = #tpu.core_type<tc>, window_params = [{transform_indices = @transform_0, window_bounds = array<i64: 8, 32>}, {pipeline_mode = #tpu.pipeline_mode<synchronous>, transform_indices = @transform_1, window_bounds = array<i64: 32, 128>}, {pipeline_mode = #tpu.pipeline_mode<synchronous>, transform_indices = @transform_2, window_bounds = array<i64: 1, 128>}, {pipeline_mode = #tpu.pipeline_mode<synchronous>, transform_indices = @transform_3, window_bounds = array<i64: 128, 128>}, {pipeline_mode = #tpu.pipeline_mode<synchronous>, transform_indices = @transform_4, window_bounds = array<i64: 1, 128>}, {pipeline_mode = #tpu.pipeline_mode<synchronous>, transform_indices = @transform_5, window_bounds = array<i64: 128, 128>}, {pipeline_mode = #tpu.pipeline_mode<synchronous>, transform_indices = @transform_6, window_bounds = array<i64: 1, 128>}, {pipeline_mode = #tpu.pipeline_mode<synchronous>, transform_indices = @transform_7, window_bounds = array<i64: 1, 128>}, {pipeline_mode = #tpu.pipeline_mode<synchronous>, transform_indices = @transform_8, window_bounds = array<i64: 1, 1>}, {transform_indices = @transform_9, window_bounds = array<i64: 8, 1>}]} {
    %c0 = arith.constant 0 : index
    %c0_0 = arith.constant 0 : index
    %0 = vector.load %arg1[%c0, %c0_0] : memref<8x32xf32, #tpu.memory_space<vmem>>, vector<8x32xf32>
    %c0_1 = arith.constant 0 : index
    %c0_2 = arith.constant 0 : index
    %1 = vector.load %arg2[%c0_1, %c0_2] : memref<32x128xf32, #tpu.memory_space<vmem>>, vector<32x128xf32>
    %cst = arith.constant dense<0.000000e+00> : vector<8x128xf32>
    %2 = tpu.matmul %0, %1, %cst {dimension_numbers = #tpu.dot_dimension_numbers<[1], [0], [0], [1], [0, 0, 1, 1], [], []>} : vector<8x32xf32>, vector<32x128xf32>, vector<8x128xf32> -> vector<8x128xf32>
    %c0_3 = arith.constant 0 : index
    %c0_4 = arith.constant 0 : index
    %3 = vector.load %arg3[%c0_3, %c0_4] : memref<1x128xf32, #tpu.memory_space<vmem>>, vector<1x128xf32>
    %4 = vector.broadcast %3 : vector<1x128xf32> to vector<8x128xf32>
    %5 = arith.addf %2, %4 : vector<8x128xf32>
    %cst_5 = arith.constant 0.000000e+00 : f32
    %6 = vector.broadcast %cst_5 : f32 to vector<8x128xf32>
    %7 = arith.maximumf %5, %6 : vector<8x128xf32>
    %c0_6 = arith.constant 0 : index
    %c0_7 = arith.constant 0 : index
    %8 = vector.load %arg4[%c0_6, %c0_7] : memref<128x128xf32, #tpu.memory_space<vmem>>, vector<128x128xf32>
    %cst_8 = arith.constant dense<0.000000e+00> : vector<8x128xf32>
    %9 = tpu.matmul %7, %8, %cst_8 {dimension_numbers = #tpu.dot_dimension_numbers<[1], [0], [0], [1], [0, 0, 1, 1], [], []>} : vector<8x128xf32>, vector<128x128xf32>, vector<8x128xf32> -> vector<8x128xf32>
    %c0_9 = arith.constant 0 : index
    %c0_10 = arith.constant 0 : index
    %10 = vector.load %arg5[%c0_9, %c0_10] : memref<1x128xf32, #tpu.memory_space<vmem>>, vector<1x128xf32>
    %11 = vector.broadcast %10 : vector<1x128xf32> to vector<8x128xf32>
    %12 = arith.addf %9, %11 : vector<8x128xf32>
    %cst_11 = arith.constant 0.000000e+00 : f32
    %13 = vector.broadcast %cst_11 : f32 to vector<8x128xf32>
    %14 = arith.maximumf %12, %13 : vector<8x128xf32>
    %c0_12 = arith.constant 0 : index
    %c0_13 = arith.constant 0 : index
    %15 = vector.load %arg6[%c0_12, %c0_13] : memref<128x128xf32, #tpu.memory_space<vmem>>, vector<128x128xf32>
    %cst_14 = arith.constant dense<0.000000e+00> : vector<8x128xf32>
    %16 = tpu.matmul %14, %15, %cst_14 {dimension_numbers = #tpu.dot_dimension_numbers<[1], [0], [0], [1], [0, 0, 1, 1], [], []>} : vector<8x128xf32>, vector<128x128xf32>, vector<8x128xf32> -> vector<8x128xf32>
    %c0_15 = arith.constant 0 : index
    %c0_16 = arith.constant 0 : index
    %17 = vector.load %arg7[%c0_15, %c0_16] : memref<1x128xf32, #tpu.memory_space<vmem>>, vector<1x128xf32>
    %18 = vector.broadcast %17 : vector<1x128xf32> to vector<8x128xf32>
    %19 = arith.addf %16, %18 : vector<8x128xf32>
    %cst_17 = arith.constant 0.000000e+00 : f32
    %20 = vector.broadcast %cst_17 : f32 to vector<8x128xf32>
    %21 = arith.maximumf %19, %20 : vector<8x128xf32>
    %c0_18 = arith.constant 0 : index
    %c0_19 = arith.constant 0 : index
    %22 = vector.load %arg8[%c0_18, %c0_19] : memref<1x128xf32, #tpu.memory_space<vmem>>, vector<1x128xf32>
    %23 = vector.broadcast %22 : vector<1x128xf32> to vector<8x128xf32>
    %24 = arith.mulf %21, %23 : vector<8x128xf32>
    %cst_20 = arith.constant dense<0.000000e+00> : vector<8xf32>
    %25 = vector.multi_reduction <add>, %24, %cst_20 [1] : vector<8x128xf32> to vector<8xf32>
    %26 = vector.shape_cast %25 : vector<8xf32> to vector<8x1xf32>
    %c0_21 = arith.constant 0 : index
    %c0_22 = arith.constant 0 : index
    %27 = vector.load %arg9[%c0_21, %c0_22] : memref<1x1xf32, #tpu.memory_space<vmem>>, vector<1x1xf32>
    %28 = vector.broadcast %27 : vector<1x1xf32> to vector<8x1xf32>
    %29 = arith.addf %26, %28 : vector<8x1xf32>
    %c0_23 = arith.constant 0 : index
    %c0_24 = arith.constant 0 : index
    %30 = vector.load %arg10[%c0_23, %c0_24] : memref<8x1xf32, #tpu.memory_space<vmem>>, vector<8x1xf32>
    tpu.vector_store %arg10[%c0_23, %c0_24], %29 {strides = array<i32>} : memref<8x1xf32, #tpu.memory_space<vmem>>, vector<8x1xf32>,
    return
  }
  func.func @transform_0(%arg0: i32) -> (i32, i32) {
    %c0_i32 = arith.constant 0 : i32
    %c0_i32_0 = arith.constant 0 : i32
    return %arg0, %c0_i32 : i32, i32
  }
  func.func @transform_1(%arg0: i32) -> (i32, i32) {
    %c0_i32 = arith.constant 0 : i32
    %c0_i32_0 = arith.constant 0 : i32
    %c0_i32_1 = arith.constant 0 : i32
    return %c0_i32, %c0_i32_0 : i32, i32
  }
  func.func @transform_2(%arg0: i32) -> (i32, i32) {
    %c0_i32 = arith.constant 0 : i32
    %c0_i32_0 = arith.constant 0 : i32
    %c0_i32_1 = arith.constant 0 : i32
    return %c0_i32, %c0_i32_0 : i32, i32
  }
  func.func @transform_3(%arg0: i32) -> (i32, i32) {
    %c0_i32 = arith.constant 0 : i32
    %c0_i32_0 = arith.constant 0 : i32
    %c0_i32_1 = arith.constant 0 : i32
    return %c0_i32, %c0_i32_0 : i32, i32
  }
  func.func @transform_4(%arg0: i32) -> (i32, i32) {
    %c0_i32 = arith.constant 0 : i32
    %c0_i32_0 = arith.constant 0 : i32
    %c0_i32_1 = arith.constant 0 : i32
    return %c0_i32, %c0_i32_0 : i32, i32
  }
  func.func @transform_5(%arg0: i32) -> (i32, i32) {
    %c0_i32 = arith.constant 0 : i32
    %c0_i32_0 = arith.constant 0 : i32
    %c0_i32_1 = arith.constant 0 : i32
    return %c0_i32, %c0_i32_0 : i32, i32
  }
  func.func @transform_6(%arg0: i32) -> (i32, i32) {
    %c0_i32 = arith.constant 0 : i32
    %c0_i32_0 = arith.constant 0 : i32
    %c0_i32_1 = arith.constant 0 : i32
    return %c0_i32, %c0_i32_0 : i32, i32
  }
  func.func @transform_7(%arg0: i32) -> (i32, i32) {
    %c0_i32 = arith.constant 0 : i32
    %c0_i32_0 = arith.constant 0 : i32
    %c0_i32_1 = arith.constant 0 : i32
    return %c0_i32, %c0_i32_0 : i32, i32
  }
  func.func @transform_8(%arg0: i32) -> (i32, i32) {
    %c0_i32 = arith.constant 0 : i32
    %c0_i32_0 = arith.constant 0 : i32
    %c0_i32_1 = arith.constant 0 : i32
    return %c0_i32, %c0_i32_0 : i32, i32
  }
  func.func @transform_9(%arg0: i32) -> (i32, i32) {
    %c0_i32 = arith.constant 0 : i32
    %c0_i32_0 = arith.constant 0 : i32
    return %arg0, %c0_i32 : i32, i32
  }
}

</mosaic_0001>

<bundles_post_ra>
// kernel: critic_forward.1
= control target key start
LH: loop header
LB: loop body
LE: loop exit
PB: predicated region body
PF: predicated region fallthrough
CT: control target
= control target key end

     0   :  { %s827_s0 = inlined_call_operand.hbm [shape: f32[8,32], index: 0, kind: input, shape index: {}]   ;;  %s828_s1 = inlined_call_operand.hbm [shape: f32[32,128], index: 1, kind: input, shape index: {}]   ;;  %s829_s2 = inlined_call_operand.vmem [shape: f32[1,128], index: 2, kind: input, shape index: {}]   ;;  %s830_s3 = inlined_call_operand.hbm [shape: f32[128,128], index: 3, kind: input, shape index: {}]   ;;  %s831_s4 = inlined_call_operand.vmem [shape: f32[1,128], index: 4, kind: input, shape index: {}]   ;;  %s832_s5 = inlined_call_operand.hbm [shape: f32[128,128], index: 5, kind: input, shape index: {}]   ;;  %s833_s6 = inlined_call_operand.vmem [shape: f32[1,128], index: 6, kind: input, shape index: {}]   ;;  %s834_s7 = inlined_call_operand.vmem [shape: f32[1,128], index: 7, kind: input, shape index: {}]   ;;  %s835_s8 = inlined_call_operand.<no memory space> [shape: f32[1,1], index: 8, kind: input, shape index: {}]   ;;  %s836_s9 = inlined_call_operand.vmem [shape: f32[8,1], index: 9, kind: output, shape index: {}]  }
   0x1   :  { %v14_v0 = vstv %s835_s8 }
   0x2   :  { %15 = vst [vmem:[#allocation2] sm:$0x1] %v14_v0 }
   0x3   :  { %16 = vsyncpa [#allocation4], 0 }
   0x4   :  { %17 = vsyncpa [#allocation6], 0 }
   0x5   :  { %18 = vsyncpa [#allocation9], 0  ;;  %s672_s11 = smov [#allocation5]   ;;  %s578_s15 = scalar_lea.hbm %s828_s1, 512 }
   0x6   :  { %s34_s12 = sshll.u32 %s672_s11, 4  ;;  %p579_p0 = scmp.ne.s32.totalorder %s828_s1, %s578_s15  ;;  %s35_s12 = int_to_ptr.vmem [resolvable:$true] %s34_s12 }
   0x7   :  { %p582_p1 = scmp.lt.u32.totalorder %s578_s15, %s828_s1 }
   0x9   :  { %p584_p2 = pnand %p582_p1, %p579_p0 }
   0xb   :  { %587 = shalt.err (!%p584_p2)
}
   0xc   :  { %s588_s8 = scalar_lea.vmem %s35_s12, 512  ;;  %p593_p4 = scmp.lt.s32.totalorder %s35_s12, %s35_s12 }
   0xd   :  { %p589_p3 = scmp.ne.s32.totalorder %s35_s12, %s588_s8  ;;  %p594_p5 = scmp.lt.s32.totalorder %s588_s8, %s588_s8 }
   0xf   :  { %p595_p6 = por %p594_p5, %p593_p4 }
  0x11   :  { %p596_p7 = pnand %p595_p6, %p589_p3 }
  0x13   :  { %599 = shalt.err (!%p596_p7)
}
  0x14   :  { %s673_s20 = smov 128   ;;  %s674_s21 = smov 8  }
  0x15   :  { %40 = dma.hbm_to_vmem [thread:$0]  %s828_s1, 512, %s35_s12, [#allocation6], %s673_s20, %s673_s20, %s674_s21  }
  0x16   :  { %s675_s24 = smov [#allocation3]   ;;  %s676_s26 = smov [#allocation7]  }
  0x17   :  { %s25_s25 = sshll.u32 %s675_s24, 4  ;;  %s48_s27 = sshll.u32 %s676_s26, 4  ;;  %s26_s25 = int_to_ptr.vmem [resolvable:$true] %s25_s25  ;;  %s49_s27 = int_to_ptr.vmem [resolvable:$true] %s48_s27 }
  0x18   :  { %s600_s30 = scalar_lea.hbm %s827_s0, 128 }
  0x19   :  { %p601_p8 = scmp.ne.s32.totalorder %s827_s0, %s600_s30  ;;  %p604_p9 = scmp.lt.u32.totalorder %s600_s30, %s827_s0 }
  0x1b   :  { %p606_p10 = pnand %p604_p9, %p601_p8 }
  0x1d   :  { %609 = shalt.err (!%p606_p10)
}
  0x1e   :  { %s610_s1 = scalar_lea.vmem %s26_s25, 128  ;;  %p615_p12 = scmp.lt.s32.totalorder %s26_s25, %s26_s25 }
  0x1f   :  { %p611_p11 = scmp.ne.s32.totalorder %s26_s25, %s610_s1  ;;  %p616_p13 = scmp.lt.s32.totalorder %s610_s1, %s610_s1 }
  0x21   :  { %p617_p0 = por %p616_p13, %p615_p12 }
  0x23   :  { %p618_p1 = pnand %p617_p0, %p611_p11 }
  0x25   :  { %621 = shalt.err (!%p618_p1)
}
  0x26   :  { %28 = dma.hbm_to_vmem [thread:$0]  %s827_s0, 128, %s26_s25, [#allocation4]  }
  0x27   :  { %s622_s18 = scalar_lea.hbm %s830_s3, 2048 }
  0x28   :  { %p623_p2 = scmp.ne.s32.totalorder %s830_s3, %s622_s18  ;;  %p626_p3 = scmp.lt.u32.totalorder %s622_s18, %s830_s3 }
  0x2a   :  { %p628_p4 = pnand %p626_p3, %p623_p2 }
  0x2c   :  { %631 = shalt.err (!%p628_p4)
}
  0x2d   :  { %s632_s24 = scalar_lea.vmem %s49_s27, 2048  ;;  %p637_p6 = scmp.lt.s32.totalorder %s49_s27, %s49_s27 }
  0x2e   :  { %p633_p5 = scmp.ne.s32.totalorder %s49_s27, %s632_s24  ;;  %p638_p7 = scmp.lt.s32.totalorder %s632_s24, %s632_s24 }
  0x30   :  { %p639_p8 = por %p638_p7, %p637_p6 }
  0x32   :  { %p640_p9 = pnand %p639_p8, %p633_p5 }
  0x34   :  { %643 = shalt.err (!%p640_p9)
}
  0x35   :  { %54 = dma.hbm_to_vmem [thread:$0]  %s830_s3, 2048, %s49_s27, [#allocation6], %s673_s20, %s673_s20, %s674_s21  }
  0x36   :  { %s677_s26 = smov [#allocation8]   ;;  %s644_s10 = scalar_lea.hbm %s832_s5, 2048 }
  0x37   :  { %s62_s28 = sshll.u32 %s677_s26, 4  ;;  %p645_p10 = scmp.ne.s32.totalorder %s832_s5, %s644_s10  ;;  %s63_s28 = int_to_ptr.vmem [resolvable:$true] %s62_s28 }
  0x38   :  { %p648_p11 = scmp.lt.u32.totalorder %s644_s10, %s832_s5 }
  0x3a   :  { %p650_p12 = pnand %p648_p11, %p645_p10 }
  0x3c   :  { %653 = shalt.err (!%p650_p12)
}
  0x3d   :  { %s654_s12 = scalar_lea.vmem %s63_s28, 2048  ;;  %p659_p0 = scmp.lt.s32.totalorder %s63_s28, %s63_s28 }
  0x3e   :  { %p655_p13 = scmp.ne.s32.totalorder %s63_s28, %s654_s12  ;;  %p660_p1 = scmp.lt.s32.totalorder %s654_s12, %s654_s12 }
  0x40   :  { %p661_p2 = por %p660_p1, %p659_p0 }
  0x42   :  { %p662_p3 = pnand %p661_p2, %p655_p13 }
  0x44   :  { %665 = shalt.err (!%p662_p3)
}
  0x45   :  { %68 = dma.hbm_to_vmem [thread:$0]  %s832_s5, 2048, %s63_s28, [#allocation9], %s673_s20, %s673_s20, %s674_s21  }
  0x46   :  { %666 = dma.done.wait [#allocation4], 128  }
  0x47   :  { %667 = vsyncadd [#allocation4], 4294967168 }
  0x48   :  { %668 = dma.done.wait [#allocation6], 2560  }
  0x49   :  { %669 = vsyncadd [#allocation6], 4294964736 }
  0x4a   :  { %670 = dma.done.wait [#allocation9], 2048  }
  0x4b   :  { %671 = vsyncadd [#allocation9], 4294965248  ;;  %v678_v1 = vmov 0.0|0.0   ;;  %vm679_vm0 = vmmov 0   ;;  %v680_v2 = vmov 0.0   ;;  %v88_v3 = vld [vmem:[#allocation5] sm:$0xff] }
  0x4c   :  { %515 = vmatprep.subr.bf16.mxu0 %v678_v1  ;;  %442 = vmatprep.mubr.msk.f32.mxu0 %vm679_vm0, %v680_v2  ;;  %v89_v4 = vld [vmem:[#allocation5 + $0x8] sm:$0xff]  ;;  %v90_v5 = vld [vmem:[#allocation5 + $0x10] sm:$0xff]  ;;  %v91_v7 = vld [vmem:[#allocation5 + $0x18] sm:$0xff]  ;;  %vm99_vm1 = vcmask 261120   ;;  %vm380_vm2 = vcmask 7168  }
  0x4d   :  { %521 = vmatprep.subr.bf16.mxu1 %v678_v1  ;;  %477 = vmatprep.mubr.msk.f32.mxu1 %vm679_vm0, %v680_v2  ;;  %v516_v6 = vpack.c.bf16 %v89_v4, %v88_v3  ;;  %v174_v8 = vld [vmem:[#allocation7] sm:$0xff]  ;;  %v175_v9 = vld [vmem:[#allocation7 + $0x8] sm:$0xff]  ;;  %v176_v10 = vld [vmem:[#allocation7 + $0x10] sm:$0xff]  ;;  %v519_v12 = vpack.c.bf16 %v91_v7, %v90_v5 }
  0x4e   :  { %v177_v11 = vld [vmem:[#allocation7 + $0x18] sm:$0xff]  ;;  %v522_v13 = vpack.c.bf16 %v175_v9, %v174_v8  ;;  %v178_v15 = vld [vmem:[#allocation7 + $0x20] sm:$0xff]  ;;  %v179_v16 = vld [vmem:[#allocation7 + $0x28] sm:$0xff] }
  0x4f   :  { %517 = vmatpush3.bf16.msra.mxu0 %v516_v6  ;;  %v525_v14 = vpack.c.bf16 %v177_v11, %v176_v10  ;;  %v87_v17 = vld [vmem:[#allocation3] sm:$0xff]  ;;  %v528_v18 = vpack.c.bf16 %v179_v16, %v178_v15  ;;  %v180_v19 = vld [vmem:[#allocation7 + $0x30] sm:$0xff]  ;;  %v182_v22 = vld [vmem:[#allocation7 + $0x40] sm:$0xff] }
  0x50   :  { %518 = vmatprep.subr.bf16.mxu0 %v678_v1  ;;  %523 = vmatpush3.bf16.msra.mxu1 %v522_v13  ;;  %v181_v20 = vld [vmem:[#allocation7 + $0x38] sm:$0xff]  ;;  %v183_v23 = vld [vmem:[#allocation7 + $0x48] sm:$0xff]  ;;  %v184_v25 = vld [vmem:[#allocation7 + $0x50] sm:$0xff] }
  0x51   :  { %524 = vmatprep.subr.bf16.mxu1 %v678_v1  ;;  %v531_v21 = vpack.c.bf16 %v181_v20, %v180_v19  ;;  %v534_v24 = vpack.c.bf16 %v183_v23, %v182_v22  ;;  %v185_v26 = vld [vmem:[#allocation7 + $0x58] sm:$0xff]  ;;  %v186_v28 = vld [vmem:[#allocation7 + $0x60] sm:$0xff]  ;;  %v187_v29 = vld [vmem:[#allocation7 + $0x68] sm:$0xff] }
  0x52   :  { %v537_v27 = vpack.c.bf16 %v185_v26, %v184_v25  ;;  %v540_v30 = vpack.c.bf16 %v187_v29, %v186_v28  ;;  %v188_v31 = vld [vmem:[#allocation7 + $0x70] sm:$0xff]  ;;  %v189_v32 = vld [vmem:[#allocation7 + $0x78] sm:$0xff]  ;;  %v268_v34 = vld [vmem:[#allocation8] sm:$0xff] }
  0x53   :  { %520 = vmatpush3.bf16.msra.mxu0 %v519_v12  ;;  %v543_v33 = vpack.c.bf16 %v189_v32, %v188_v31  ;;  %v269_v35 = vld [vmem:[#allocation8 + $0x8] sm:$0xff]  ;;  %v270_v36 = vld [vmem:[#allocation8 + $0x10] sm:$0xff]  ;;  %v271_v38 = vld [vmem:[#allocation8 + $0x18] sm:$0xff] }
  0x54   :  { %545 = vmatprep.subr.bf16.mxu0 %v678_v1  ;;  %526 = vmatpush3.bf16.msra.mxu1 %v525_v14  ;;  %v546_v37 = vpack.c.bf16 %v269_v35, %v268_v34  ;;  %v549_v39 = vpack.c.bf16 %v271_v38, %v270_v36  ;;  %v272_v40 = vld [vmem:[#allocation8 + $0x20] sm:$0xff]  ;;  %v273_v41 = vld [vmem:[#allocation8 + $0x28] sm:$0xff]  ;;  %v274_v43 = vld [vmem:[#allocation8 + $0x30] sm:$0xff] }
  0x55   :  { %527 = vmatprep.subr.bf16.mxu1 %v678_v1  ;;  %v552_v42 = vpack.c.bf16 %v273_v41, %v272_v40  ;;  %v275_v44 = vld [vmem:[#allocation8 + $0x38] sm:$0xff]  ;;  %v276_v46 = vld [vmem:[#allocation8 + $0x40] sm:$0xff]  ;;  %v277_v47 = vld [vmem:[#allocation8 + $0x48] sm:$0xff] }
  0x56   :  { %443 = vmatmul.mubr.msk.f32.vlgmr.msra.gmra.mrb[0].mxu0 %vm99_vm1, %v87_v17  ;;  %v555_v45 = vpack.c.bf16 %v275_v44, %v274_v43  ;;  %v558_v48 = vpack.c.bf16 %v277_v47, %v276_v46  ;;  %v278_v49 = vld [vmem:[#allocation8 + $0x50] sm:$0xff]  ;;  %v279_v50 = vld [vmem:[#allocation8 + $0x58] sm:$0xff]  ;;  %v280_v52 = vld [vmem:[#allocation8 + $0x60] sm:$0xff] }
  0x57   :  { %512 = vmatprep.mubr.msk.f32.mxu0 %vm679_vm0, %v680_v2  ;;  %547 = vmatpush3.bf16.msra.mxu0 %v546_v37  ;;  %v561_v51 = vpack.c.bf16 %v279_v50, %v278_v49  ;;  %v281_v53 = vld [vmem:[#allocation8 + $0x68] sm:$0xff]  ;;  %v389_v55 = vld [vmem:[%s829_s2] ss:$0 sm:$0xff]  ;;  %v283_v61 = vld [vmem:[#allocation8 + $0x78] sm:$0xff] }
  0x58   :  { %529 = vmatpush3.bf16.msra.mxu1 %v528_v18  ;;  %548 = vmatprep.subr.bf16.mxu0 %v678_v1  ;;  %v564_v54 = vpack.c.bf16 %v281_v53, %v280_v52  ;;  %v282_v60 = vld [vmem:[#allocation8 + $0x70] sm:$0xff] }
  0x59   :  { %530 = vmatprep.subr.bf16.mxu1 %v678_v1  ;;  %v567_v62 = vpack.c.bf16 %v283_v61, %v282_v60  ;;  %v391_v63 = vld [vmem:[%s831_s4] ss:$0 sm:$0xff] }
  0x5a   :  { %v392_v4 = vld [vmem:[%s833_s6] ss:$0 sm:$0xff] }
  0x5b   :  { %550 = vmatpush3.bf16.msra.mxu0 %v549_v39  ;;  %v393_v8 = vld [vmem:[%s834_s7] ss:$0 sm:$0xff] }
  0x5c   :  { %532 = vmatpush3.bf16.msra.mxu1 %v531_v21  ;;  %551 = vmatprep.subr.bf16.mxu0 %v678_v1  ;;  %v394_v11 = vld [vmem:[#allocation2] ss:$0 sm:$0xff] }
  0x5d   :  { %533 = vmatprep.subr.bf16.mxu1 %v678_v1 }
  0x5f   :  { %553 = vmatpush3.bf16.msra.mxu0 %v552_v42 }
  0x60   :  { %535 = vmatpush3.bf16.msra.mxu1 %v534_v24  ;;  %554 = vmatprep.subr.bf16.mxu0 %v678_v1 }
  0x61   :  { %536 = vmatprep.subr.bf16.mxu1 %v678_v1 }
  0x63   :  { %556 = vmatpush3.bf16.msra.mxu0 %v555_v45 }
  0x64   :  { %538 = vmatpush3.bf16.msra.mxu1 %v537_v27  ;;  %557 = vmatprep.subr.bf16.mxu0 %v678_v1 }
  0x65   :  { %539 = vmatprep.subr.bf16.mxu1 %v678_v1 }
  0x67   :  { %559 = vmatpush3.bf16.msra.mxu0 %v558_v48 }
  0x68   :  { %541 = vmatpush3.bf16.msra.mxu1 %v540_v30  ;;  %560 = vmatprep.subr.bf16.mxu0 %v678_v1 }
  0x69   :  { %542 = vmatprep.subr.bf16.mxu1 %v678_v1 }
  0x6b   :  { %562 = vmatpush3.bf16.msra.mxu0 %v561_v51 }
  0x6c   :  { %544 = vmatpush3.bf16.msra.mxu1 %v543_v33  ;;  %563 = vmatprep.subr.bf16.mxu0 %v678_v1 }
  0x6f   :  { %565 = vmatpush3.bf16.msra.mxu0 %v564_v54 }
  0x70   :  { %566 = vmatprep.subr.bf16.mxu0 %v678_v1 }
  0x73   :  { %568 = vmatpush3.bf16.msra.mxu0 %v567_v62 }
 0x129   :  { %v169_v56 = vpop.f32.mrb[0].mxu0 }
 0x12a   :  { %v170_v57 = vadd.f32 %v389_v55, %v169_v56  ;;  %v444_v58 = vpop.f32.mrb[1].mxu0 }
 0x12c   :  { %v173_v59 = vmax.f32 %v170_v57, 0.0 }
 0x12e   :  { %478 = vmatmul.mubr.f32.vlgmr.msra.gmra.mrb[0].mxu1 %v173_v59 }
 0x201   :  { %v263_v0 = vpop.f32.mrb[0].mxu1 }
 0x202   :  { %v264_v2 = vadd.f32 %v391_v63, %v263_v0  ;;  %v479_v1 = vpop.f32.mrb[1].mxu1 }
 0x204   :  { %v267_v3 = vmax.f32 %v264_v2, 0.0 }
 0x206   :  { %513 = vmatmul.mubr.f32.vlgmr.msra.gmra.mrb[2].mxu0 %v267_v3 }
 0x2d9   :  { %v357_v5 = vpop.f32.mrb[2].mxu0 }
 0x2da   :  { %v358_v6 = vadd.f32 %v392_v4, %v357_v5  ;;  %v514_v7 = vpop.f32.mrb[3].mxu0 }
 0x2dc   :  { %v361_v9 = vmax.f32 %v358_v6, 0.0 }
 0x2de   :  { %v369_v10 = vmul.f32 %v393_v8, %v361_v9 }
 0x2e0   :  { %370 = vadd.xlane.f32.xlu0 %v369_v10 }
 0x36d   :  { %v371_v12 = vpop.xlane.xlu0 %370 }
 0x36e   :  { %v379_v13 = vadd.f32 %v394_v11, %v371_v12 }
 0x370   :  { %381 = vst.msk [vmem:[%s836_s9] sm:$0xff] %vm380_vm2, %v379_v13 }
 0x371   :  { %386 = vsyncpa [#allocation4], 1 }
 0x372   :  { %387 = vsyncpa [#allocation6], 1 }
 0x373   :  { %388 = vsyncpa [#allocation9], 1 }

</bundles_post_ra>
